<compile_context>
chip_gen: v6e
topology: v6e:2x2x1
jax: 0.10.0
libtpu: 0.0.40
codegen_flags: <defaults>
</compile_context>

<pallas_src>
import jax
import jax.numpy as jnp
from jax import lax
from jax.experimental import pallas as pl
from jax.experimental.pallas import tpu as pltpu


_C = 2        # number of edge classes (nn.Linear(2H, 2))
_C_PAD = 8    # pad class rows to one sublane tile for the matmul
_LANE = 128

# Contract the feature axis of both operands: (C_PAD, H) x (TE, H) -> (C_PAD, TE).
_NT_DIMS = (((1,), (1,)), ((), ()))


def _round_up(x, m):
    return -(-x // m) * m


def _vmem_limit_bytes():
    """Per-generation scoped-VMEM budget (review): ~90 MiB on v5e/v6e
    (128 MiB physical), ~45 MiB on v7x (64 MiB physical per TensorCore)."""
    try:
        cap = int(pltpu.get_tpu_info().vmem_capacity_bytes)
    except Exception:
        cap = 64 * 1024 * 1024  # conservative: assume v7x-sized VMEM
    return min(cap * 7 // 10, 96 * 1024 * 1024)


def _pick_edge_tile(e_pad, *, stream_bytes_per_edge, working_bytes_per_edge,
                    tile_budget_bytes, target_block_bytes, max_edges_per_tile):
    """Edge-tile size: target bytes per streamed block, clamped by the VMEM
    budget left after residents, kept >= 2 grid steps for v7x megacore."""
    te = target_block_bytes // max(stream_bytes_per_edge, 1)
    te = min(te, max(tile_budget_bytes, 0) // max(working_bytes_per_edge, 1))
    if max_edges_per_tile is not None:
        te = min(te, max_edges_per_tile)
    if e_pad >= 2 * _LANE:
        # Keep at least two grid steps so the "parallel" axis can be sharded
        # across the two TensorCores on v7x.
        te = min(te, pl.cdiv(e_pad, 2))
    te = max(_LANE, int(te) // _LANE * _LANE)
    return min(te, e_pad)


# ----------------------------------------------------------------------------
# Kernel bodies
# ----------------------------------------------------------------------------

def _edge_log_softmax(src, dst, w_src, w_dst, b):
    """src/dst: (TE, H); w_*: (C_PAD, H); b: (C_PAD, 1) f32 -> (C, TE) f32."""
    logits = (
        lax.dot_general(w_src, src, _NT_DIMS, preferred_element_type=jnp.float32)
        + lax.dot_general(w_dst, dst, _NT_DIMS, preferred_element_type=jnp.float32)
        + b
    )                                   # (C_PAD, TE) f32
    logits = logits[:_C]                # only the real classes (padded rows are 0)
    m = jnp.max(logits, axis=0, keepdims=True)
    shifted = logits - m
    lse = jnp.log(jnp.sum(jnp.exp(shifted), axis=0, keepdims=True))
    return shifted - lse                # (C, TE) f32


def _gather_rows(nodes, ids, gather_mode):
    """Gather node rows in-kernel.  nodes: (N_pad, H); ids: (TE, 1) int32."""
    te = ids.shape[0]
    n_pad, h = nodes.shape
    if gather_mode == "take":
        # Preferred: dynamic row gather on the VMEM-resident node table.
        idx = jnp.broadcast_to(ids, (te, h))
        return jnp.take_along_axis(nodes, idx, axis=0)
    elif gather_mode == "onehot":
        # Fallback: one-hot matmul gather on the MXU (exact selection).
        cols = lax.broadcasted_iota(jnp.int32, (te, n_pad), 1)
        onehot = (cols == ids).astype(nodes.dtype)
        rows = lax.dot_general(onehot, nodes, (((1,), (0,)), ((), ())),
                               preferred_element_type=jnp.float32)
        return rows.astype(nodes.dtype)
    raise ValueError(f"unknown gather_mode: {gather_mode}")


def _make_fused_kernel(gather_mode):
    def kernel(src_ids_ref, dst_ids_ref, nodes_ref, wsrc_ref, wdst_ref, b_ref,
               out_ref):
        nodes = nodes_ref[...]                                # resident (N_pad, H)
        src = _gather_rows(nodes, src_ids_ref[...], gather_mode)
        dst = _gather_rows(nodes, dst_ids_ref[...], gather_mode)
        out_ref[...] = _edge_log_softmax(src, dst, wsrc_ref[...], wdst_ref[...],
                                         b_ref[...])
    return kernel


def _unfused_kernel(src_ref, dst_ref, wsrc_ref, wdst_ref, b_ref, out_ref):
    out_ref[...] = _edge_log_softmax(src_ref[...], dst_ref[...],
                                     wsrc_ref[...], wdst_ref[...], b_ref[...])


# ----------------------------------------------------------------------------
# Host-side paths
# ----------------------------------------------------------------------------

def _forward_fused(gather_mode, node_features, edges, w_src, w_dst, b_pad, *,
                   compute_dtype, vmem_limit, target_block_bytes,
                   max_edges_per_tile):
    N, H = node_features.shape
    E = edges.shape[1]
    cdt = jnp.dtype(compute_dtype)
    isz = cdt.itemsize
    n_pad = _round_up(max(N, 8), 16 if isz < 4 else 8)
    h_vmem = _round_up(H, _LANE)

    nodes = jnp.zeros((n_pad, H), cdt).at[:N].set(node_features.astype(cdt))

    # VMEM accounting (review): residents (x2, the pipeline still allocates two
    # buffers for constant blocks), per-edge id/output double buffers and the
    # gathered-value temporaries.
    resident = 2 * (n_pad * h_vmem * isz + 2 * _C_PAD * h_vmem * isz
                    + _C_PAD * _LANE * 4)
    tile_budget = vmem_limit - resident - 2 * 1024 * 1024

    ids_per_edge = 2 * 2 * (_LANE * 4)          # 2 id arrays, 2 buffers, lane-padded
    out_per_edge = 2 * (8 * 4)                  # (2, te) f32 out block, 2 buffers
    vals_per_edge = 2 * H * isz + 12 * 4        # gathered rows + f32 softmax temps
    if gather_mode == "onehot":
        vals_per_edge += 2 * (4 + isz) * n_pad  # iota + one-hot temporaries
    working_per_edge = ids_per_edge + out_per_edge + vals_per_edge

    te = _pick_edge_tile(
        _round_up(max(E, 1), _LANE),
        stream_bytes_per_edge=4,                # ids are the only per-edge HBM stream
        working_bytes_per_edge=working_per_edge,
        tile_budget_bytes=tile_budget,
        target_block_bytes=target_block_bytes,
        max_edges_per_tile=max_edges_per_tile)
    num_tiles = pl.cdiv(E, te)
    e_pad = num_tiles * te

    src_ids = jnp.zeros((e_pad, 1), jnp.int32).at[:E, 0].set(edges[0])
    dst_ids = jnp.zeros((e_pad, 1), jnp.int32).at[:E, 0].set(edges[1])

    flops = 4 * e_pad * H * _C_PAD
    if gather_mode == "onehot":
        flops += 4 * e_pad * n_pad * H
    cost = pl.CostEstimate(
        flops=flops,
        transcendentals=3 * e_pad,
        bytes_accessed=(2 * e_pad * 4 + n_pad * H * isz
                        + 2 * _C_PAD * H * isz + _C_PAD * 4 + _C * e_pad * 4))

    out = pl.pallas_call(
        _make_fused_kernel(gather_mode),
        out_shape=jax.ShapeDtypeStruct((_C, e_pad), jnp.float32),
        grid_spec=pltpu.PrefetchScalarGridSpec(
            num_scalar_prefetch=0,
            grid=(num_tiles,),
            in_specs=[
                pl.BlockSpec((te, 1), lambda i: (i, 0)),       # src edge ids
                pl.BlockSpec((te, 1), lambda i: (i, 0)),       # dst edge ids
                pl.BlockSpec((n_pad, H), lambda i: (0, 0)),    # node table (resident)
                pl.BlockSpec((_C_PAD, H), lambda i: (0, 0)),   # w_src (resident)
                pl.BlockSpec((_C_PAD, H), lambda i: (0, 0)),   # w_dst (resident)
                pl.BlockSpec((_C_PAD, 1), lambda i: (0, 0)),   # bias  (resident)
            ],
            out_specs=pl.BlockSpec((_C, te), lambda i: (0, i)),
        ),
        compiler_params=pltpu.CompilerParams(
            dimension_semantics=("parallel",),
            vmem_limit_bytes=vmem_limit),
        cost_estimate=cost,
    )(src_ids, dst_ids, nodes, w_src, w_dst, b_pad)

    return out[:, :E].T  # back to the module's [E, 2] layout


def _forward_unfused(node_features, edges, w_src, w_dst, b_pad, *,
                     compute_dtype, vmem_limit, target_block_bytes,
                     max_edges_per_tile, stream_buffers=2):
    # TODO(synk): for node tables too large for VMEM, replace the XLA gather
    # below with an in-kernel manual DMA row gather (node_features in pl.ANY +
    # SMEM edge ids + pltpu.make_async_copy with deep buffering).
    N, H = node_features.shape
    E = edges.shape[1]
    cdt = jnp.dtype(compute_dtype)
    isz = cdt.itemsize
    h_vmem = _round_up(H, _LANE)

    resident = 2 * (2 * _C_PAD * h_vmem * isz + _C_PAD * _LANE * 4)
    tile_budget = vmem_limit - resident - 2 * 1024 * 1024
    working_per_edge = (2 * stream_buffers * h_vmem * isz   # src + dst stream buffers
                        + 2 * (8 * 4)                       # output double buffers
                        + 12 * 4)                           # f32 softmax temps
    te = _pick_edge_tile(
        _round_up(max(E, 1), _LANE),
        stream_bytes_per_edge=h_vmem * isz,    # ~1-2 MiB per (te, H) stream block
        working_bytes_per_edge=working_per_edge,
        tile_budget_bytes=tile_budget,
        target_block_bytes=target_block_bytes,
        max_edges_per_tile=max_edges_per_tile)
    num_tiles = pl.cdiv(E, te)
    e_pad = num_tiles * te

    edges_p = jnp.pad(edges, ((0, 0), (0, e_pad - E)))
    nf_c = node_features.astype(cdt)           # cast once: gather moves bf16, not f32
    src = nf_c[edges_p[0]]                     # [e_pad, H]
    dst = nf_c[edges_p[1]]

    # Optional deeper pipelining (v7x: set stream_buffers=3 if profiling shows
    # exposed DMA between grid steps); budget above already scales with it.
    if stream_buffers > 2:
        stream_spec = lambda: pl.BlockSpec((te, H), lambda i: (i, 0),
                                           pipeline_mode=pl.Buffered(stream_buffers))
    else:
        stream_spec = lambda: pl.BlockSpec((te, H), lambda i: (i, 0))

    cost = pl.CostEstimate(
        flops=4 * e_pad * H * _C_PAD,
        transcendentals=3 * e_pad,
        bytes_accessed=(2 * e_pad * H * isz + 2 * _C_PAD * H * isz + _C_PAD * 4
                        + _C * e_pad * 4))

    out = pl.pallas_call(
        _unfused_kernel,
        out_shape=jax.ShapeDtypeStruct((_C, e_pad), jnp.float32),
        grid_spec=pltpu.PrefetchScalarGridSpec(
            num_scalar_prefetch=0,
            grid=(num_tiles,),
            in_specs=[
                stream_spec(),                                 # src rows
                stream_spec(),                                 # dst rows
                pl.BlockSpec((_C_PAD, H), lambda i: (0, 0)),   # w_src (resident)
                pl.BlockSpec((_C_PAD, H), lambda i: (0, 0)),   # w_dst (resident)
                pl.BlockSpec((_C_PAD, 1), lambda i: (0, 0)),   # bias  (resident)
            ],
            out_specs=pl.BlockSpec((_C, te), lambda i: (0, i)),
        ),
        compiler_params=pltpu.CompilerParams(
            dimension_semantics=("parallel",),
            vmem_limit_bytes=vmem_limit),
        cost_estimate=cost,
    )(src, dst, w_src, w_dst, b_pad)

    return out[:, :E].T


def link_prediction_forward(node_features, edges, weight, bias, *,
                            compute_dtype=jnp.bfloat16,
                            fuse_gather=True,
                            gather_mode=None,
                            allow_fallback=True,
                            target_block_bytes=2 * 1024 * 1024,
                            max_edges_per_tile=None,
                            stream_buffers=2):
    """Pallas implementation of LinkPrediction.forward.

    node_features: [N, H] float32, edges: [2, E] int, weight: [2, 2H], bias: [2]
    returns: [E, 2] float32 log-softmax logits.

    bf16 is the default for the feature/weight streams (accumulation, softmax
    and the output stay f32); pass compute_dtype=jnp.float32 for exact results.
    """
    node_features = jnp.asarray(node_features)
    edges = jnp.asarray(edges, dtype=jnp.int32)
    weight = jnp.asarray(weight)
    bias = jnp.asarray(bias)

    N, H = node_features.shape
    if weight.shape != (_C, 2 * H) or bias.shape != (_C,):
        raise ValueError("expected weight (2, 2*hidden_dim) and bias (2,)")

    cdt = jnp.dtype(compute_dtype)
    isz = cdt.itemsize
    vmem_limit = _vmem_limit_bytes()

    # Fold the concat into two half-weight matmuls:
    #   cat([s, d]) @ W.T == s @ W[:, :H].T + d @ W[:, H:].T
    w_c = weight.astype(cdt)
    w_src = jnp.zeros((_C_PAD, H), cdt).at[:_C].set(w_c[:, :H])
    w_dst = jnp.zeros((_C_PAD, H), cdt).at[:_C].set(w_c[:, H:])
    b_pad = jnp.zeros((_C_PAD, 1), jnp.float32).at[:_C, 0].set(bias.astype(jnp.float32))

    # Can the node table stay resident in VMEM (fused-gather path)?
    n_pad = _round_up(max(N, 8), 16 if isz < 4 else 8)
    h_vmem = _round_up(H, _LANE)
    resident_fused = 2 * (n_pad * h_vmem * isz + 2 * _C_PAD * h_vmem * isz)
    fused_fits = resident_fused <= max(vmem_limit - 8 * 1024 * 1024, 0) // 2

    attempts = []
    if fuse_gather and fused_fits:
        if gather_mode is not None:
            attempts.append(("fused", gather_mode))
        else:
            attempts.append(("fused", "take"))       # preferred in-kernel row gather
            if n_pad <= 8192:                        # one-hot gather is O(N) per edge
                attempts.append(("fused", "onehot"))
    attempts.append(("xla", None))                   # wrapper-side gather fallback

    kwargs = dict(compute_dtype=compute_dtype, vmem_limit=vmem_limit,
                  target_block_bytes=target_block_bytes,
                  max_edges_per_tile=max_edges_per_tile)

    def _run(path, mode):
        if path == "fused":
            return _forward_fused(mode, node_features, edges, w_src, w_dst,
                                  b_pad, **kwargs)
        return _forward_unfused(node_features, edges, w_src, w_dst, b_pad,
                                stream_buffers=stream_buffers, **kwargs)

    if not allow_fallback:
        path, mode = attempts[0]
        return _run(path, mode)

    # Mosaic's dynamic-gather lowering support differs across TPU generations /
    # jax versions; probe the preferred mode and fall back if it cannot lower.
    for i, (path, mode) in enumerate(attempts):
        try:
            return _run(path, mode)
        except Exception:
            if i == len(attempts) - 1:
                raise


def _reference_forward(node_features, edges, weight, bias):
    src = node_features[edges[0]]
    dst = node_features[edges[1]]
    edge_features = jnp.concatenate([src, dst], axis=1)
    logits = edge_features @ weight.T + bias
    return jax.nn.log_softmax(logits, axis=1)


if __name__ == "__main__":
    key = jax.random.PRNGKey(0)
    k_feat, k_w, k_b, k_e0, k_e1 = jax.random.split(key, 5)

    N, H = 16, 32
    node_features = jax.random.normal(k_feat, (N, H), dtype=jnp.float32)
    bound = 1.0 / jnp.sqrt(2.0 * H)
    weight = jax.random.uniform(k_w, (2, 2 * H), jnp.float32, -bound, bound)
    bias = jax.random.uniform(k_b, (2,), jnp.float32, -bound, bound)

    def ref(e):
        return _reference_forward(node_features, e, weight, bias)

    # Case 1: defaults (fused in-kernel gather, bf16 streams), tiny edge set.
    E1 = 16
    edges1 = jnp.stack(
        [jax.random.randint(k_e0, (E1,), 0, N, dtype=jnp.int32),
         jax.random.randint(k_e1, (E1,), 0, N, dtype=jnp.int32)], axis=0)
    out1 = jax.block_until_ready(
        link_prediction_forward(node_features, edges1, weight, bias))
    assert out1.shape == (E1, 2)
    assert bool(jnp.all(jnp.isfinite(out1)))
    assert jnp.allclose(out1, ref(edges1), atol=5e-2, rtol=5e-2)

    # Case 2: fused one-hot (MXU) gather, f32, forced small tiles -> 3 grid
    # steps with a ragged final tile; no fallback allowed, tight tolerance.
    E2 = 300
    edges2 = jnp.stack(
        [jax.random.randint(k_e1, (E2,), 0, N, dtype=jnp.int32),
         jax.random.randint(k_e0, (E2,), 0, N, dtype=jnp.int32)], axis=0)
    out2 = jax.block_until_ready(link_prediction_forward(
        node_features, edges2, weight, bias, compute_dtype=jnp.float32,
        gather_mode="onehot", allow_fallback=False, max_edges_per_tile=128))
    assert out2.shape == (E2, 2)
    assert jnp.allclose(out2, ref(edges2), atol=1e-5, rtol=1e-5)

    # Case 3: fused path with the default mode chain (take -> onehot), f32.
    out3 = jax.block_until_ready(link_prediction_forward(
        node_features, edges2, weight, bias, compute_dtype=jnp.float32))
    assert out3.shape == (E2, 2)
    assert jnp.allclose(out3, ref(edges2), atol=1e-5, rtol=1e-5)

    # Case 4: streaming (unfused) fallback path, bf16 streams, multi-tile.
    out4 = jax.block_until_ready(link_prediction_forward(
        node_features, edges2, weight, bias, fuse_gather=False,
        max_edges_per_tile=128))
    assert out4.shape == (E2, 2)
    assert jnp.allclose(out4, ref(edges2), atol=5e-2, rtol=5e-2)

    # Case 5: streaming fallback in f32 (tight tolerance).
    out5 = jax.block_until_ready(link_prediction_forward(
        node_features, edges2, weight, bias, fuse_gather=False,
        compute_dtype=jnp.float32, max_edges_per_tile=128))
    assert out5.shape == (E2, 2)
    assert jnp.allclose(out5, ref(edges2), atol=1e-5, rtol=1e-5)

    print("KERNEL_OK")
</pallas_src>

<mosaic_0001>
module attributes {stable_mosaic.version = 11 : i64} {
  func.func @kernel(%arg0: i32, %arg1: memref<128x1xi32, #tpu.memory_space<vmem>>, %arg2: memref<128x1xi32, #tpu.memory_space<vmem>>, %arg3: memref<16x32xbf16, #tpu.memory_space<vmem>>, %arg4: memref<8x32xbf16, #tpu.memory_space<vmem>>, %arg5: memref<8x32xbf16, #tpu.memory_space<vmem>>, %arg6: memref<8x1xf32, #tpu.memory_space<vmem>>, %arg7: memref<2x128xf32, #tpu.memory_space<vmem>>) attributes {dimension_semantics = [#tpu.dimension_semantics<parallel>], iteration_bounds = array<i64: 1>, scalar_prefetch = 0 : i64, scratch_operands = 0 : i64, tpu.core_type = #tpu.core_type<tc>, window_params = [{transform_indices = @transform_0, window_bounds = array<i64: 128, 1>}, {transform_indices = @transform_1, window_bounds = array<i64: 128, 1>}, {pipeline_mode = #tpu.pipeline_mode<synchronous>, transform_indices = @transform_2, window_bounds = array<i64: 16, 32>}, {pipeline_mode = #tpu.pipeline_mode<synchronous>, transform_indices = @transform_3, window_bounds = array<i64: 8, 32>}, {pipeline_mode = #tpu.pipeline_mode<synchronous>, transform_indices = @transform_4, window_bounds = array<i64: 8, 32>}, {pipeline_mode = #tpu.pipeline_mode<synchronous>, transform_indices = @transform_5, window_bounds = array<i64: 8, 1>}, {transform_indices = @transform_6, window_bounds = array<i64: 2, 128>}]} {
    %c0 = arith.constant 0 : index
    %c0_0 = arith.constant 0 : index
    %0 = vector.load %arg3[%c0, %c0_0] : memref<16x32xbf16, #tpu.memory_space<vmem>>, vector<16x32xbf16>
    %c0_1 = arith.constant 0 : index
    %c0_2 = arith.constant 0 : index
    %1 = vector.load %arg1[%c0_1, %c0_2] : memref<128x1xi32, #tpu.memory_space<vmem>>, vector<128x1xi32>
    %2 = vector.shape_cast %1 : vector<128x1xi32> to vector<128x1xi32>
    %3 = vector.broadcast %2 : vector<128x1xi32> to vector<128x32xi32>
    %c0_i32 = arith.constant 0 : i32
    %4 = vector.broadcast %c0_i32 : i32 to vector<128x32xi32>
    %5 = arith.cmpi slt, %3, %4 : vector<128x32xi32>
    %c16_i32 = arith.constant 16 : i32
    %6 = vector.broadcast %c16_i32 : i32 to vector<128x32xi32>
    %7 = arith.addi %3, %6 : vector<128x32xi32>
    %8 = arith.select %5, %7, %3 : vector<128x32xi1>, vector<128x32xi32>
    %9 = vector.shape_cast %8 : vector<128x32xi32> to vector<128x32x1xi32>
    %10 = vector.shape_cast %9 : vector<128x32x1xi32> to vector<128x32xi32>
    %11 = tpu.dynamic_gather %0[%10] in [0] : vector<16x32xbf16>, vector<128x32xi32> -> vector<128x32xbf16>
    %c0_3 = arith.constant 0 : index
    %c0_4 = arith.constant 0 : index
    %12 = vector.load %arg2[%c0_3, %c0_4] : memref<128x1xi32, #tpu.memory_space<vmem>>, vector<128x1xi32>
    %13 = vector.shape_cast %12 : vector<128x1xi32> to vector<128x1xi32>
    %14 = vector.broadcast %13 : vector<128x1xi32> to vector<128x32xi32>
    %c0_i32_5 = arith.constant 0 : i32
    %15 = vector.broadcast %c0_i32_5 : i32 to vector<128x32xi32>
    %16 = arith.cmpi slt, %14, %15 : vector<128x32xi32>
    %c16_i32_6 = arith.constant 16 : i32
    %17 = vector.broadcast %c16_i32_6 : i32 to vector<128x32xi32>
    %18 = arith.addi %14, %17 : vector<128x32xi32>
    %19 = arith.select %16, %18, %14 : vector<128x32xi1>, vector<128x32xi32>
    %20 = vector.shape_cast %19 : vector<128x32xi32> to vector<128x32x1xi32>
    %21 = vector.shape_cast %20 : vector<128x32x1xi32> to vector<128x32xi32>
    %22 = tpu.dynamic_gather %0[%21] in [0] : vector<16x32xbf16>, vector<128x32xi32> -> vector<128x32xbf16>
    %c0_7 = arith.constant 0 : index
    %c0_8 = arith.constant 0 : index
    %23 = vector.load %arg4[%c0_7, %c0_8] : memref<8x32xbf16, #tpu.memory_space<vmem>>, vector<8x32xbf16>
    %c0_9 = arith.constant 0 : index
    %c0_10 = arith.constant 0 : index
    %24 = vector.load %arg5[%c0_9, %c0_10] : memref<8x32xbf16, #tpu.memory_space<vmem>>, vector<8x32xbf16>
    %c0_11 = arith.constant 0 : index
    %c0_12 = arith.constant 0 : index
    %25 = vector.load %arg6[%c0_11, %c0_12] : memref<8x1xf32, #tpu.memory_space<vmem>>, vector<8x1xf32>
    %cst = arith.constant dense<0.000000e+00> : vector<8x128xf32>
    %26 = tpu.matmul %23, %11, %cst {dimension_numbers = #tpu.dot_dimension_numbers<[1], [1], [0], [0], [0, 0, 1, 0], [], []>} : vector<8x32xbf16>, vector<128x32xbf16>, vector<8x128xf32> -> vector<8x128xf32>
    %cst_13 = arith.constant dense<0.000000e+00> : vector<8x128xf32>
    %27 = tpu.matmul %24, %22, %cst_13 {dimension_numbers = #tpu.dot_dimension_numbers<[1], [1], [0], [0], [0, 0, 1, 0], [], []>} : vector<8x32xbf16>, vector<128x32xbf16>, vector<8x128xf32> -> vector<8x128xf32>
    %28 = arith.addf %26, %27 : vector<8x128xf32>
    %29 = vector.broadcast %25 : vector<8x1xf32> to vector<8x128xf32>
    %30 = arith.addf %28, %29 : vector<8x128xf32>
    %31 = vector.extract_strided_slice %30 {offsets = [0, 0], sizes = [2, 128], strides = [1, 1]} : vector<8x128xf32> to vector<2x128xf32>
    %cst_14 = arith.constant dense<0xFF800000> : vector<128xf32>
    %32 = vector.multi_reduction <maximumf>, %31, %cst_14 [0] : vector<2x128xf32> to vector<128xf32>
    %33 = vector.shape_cast %32 : vector<128xf32> to vector<1x128xf32>
    %34 = vector.broadcast %33 : vector<1x128xf32> to vector<2x128xf32>
    %35 = arith.subf %31, %34 : vector<2x128xf32>
    %36 = math.exp %35 : vector<2x128xf32>
    %cst_15 = arith.constant dense<0.000000e+00> : vector<128xf32>
    %37 = vector.multi_reduction <add>, %36, %cst_15 [0] : vector<2x128xf32> to vector<128xf32>
    %38 = vector.shape_cast %37 : vector<128xf32> to vector<1x128xf32>
    %39 = math.log %38 : vector<1x128xf32>
    %40 = vector.broadcast %39 : vector<1x128xf32> to vector<2x128xf32>
    %41 = arith.subf %35, %40 : vector<2x128xf32>
    %c0_16 = arith.constant 0 : index
    %c0_17 = arith.constant 0 : index
    %42 = vector.load %arg7[%c0_16, %c0_17] : memref<2x128xf32, #tpu.memory_space<vmem>>, vector<2x128xf32>
    tpu.vector_store %arg7[%c0_16, %c0_17], %41 {strides = array<i32>} : memref<2x128xf32, #tpu.memory_space<vmem>>, vector<2x128xf32>,
    return
  }
  func.func @transform_0(%arg0: i32) -> (i32, i32) {
    %c0_i32 = arith.constant 0 : i32
    %c0_i32_0 = arith.constant 0 : i32
    return %arg0, %c0_i32 : i32, i32
  }
  func.func @transform_1(%arg0: i32) -> (i32, i32) {
    %c0_i32 = arith.constant 0 : i32
    %c0_i32_0 = arith.constant 0 : i32
    return %arg0, %c0_i32 : i32, i32
  }
  func.func @transform_2(%arg0: i32) -> (i32, i32) {
    %c0_i32 = arith.constant 0 : i32
    %c0_i32_0 = arith.constant 0 : i32
    %c0_i32_1 = arith.constant 0 : i32
    return %c0_i32, %c0_i32_0 : i32, i32
  }
  func.func @transform_3(%arg0: i32) -> (i32, i32) {
    %c0_i32 = arith.constant 0 : i32
    %c0_i32_0 = arith.constant 0 : i32
    %c0_i32_1 = arith.constant 0 : i32
    return %c0_i32, %c0_i32_0 : i32, i32
  }
  func.func @transform_4(%arg0: i32) -> (i32, i32) {
    %c0_i32 = arith.constant 0 : i32
    %c0_i32_0 = arith.constant 0 : i32
    %c0_i32_1 = arith.constant 0 : i32
    return %c0_i32, %c0_i32_0 : i32, i32
  }
  func.func @transform_5(%arg0: i32) -> (i32, i32) {
    %c0_i32 = arith.constant 0 : i32
    %c0_i32_0 = arith.constant 0 : i32
    %c0_i32_1 = arith.constant 0 : i32
    return %c0_i32, %c0_i32_0 : i32, i32
  }
  func.func @transform_6(%arg0: i32) -> (i32, i32) {
    %c0_i32 = arith.constant 0 : i32
    %c0_i32_0 = arith.constant 0 : i32
    return %c0_i32, %arg0 : i32, i32
  }
}

module attributes {stable_mosaic.version = 11 : i64} {
  func.func @kernel(%arg0: i32, %arg1: memref<128x1xi32, #tpu.memory_space<vmem>>, %arg2: memref<128x1xi32, #tpu.memory_space<vmem>>, %arg3: memref<16x32xbf16, #tpu.memory_space<vmem>>, %arg4: memref<8x32xbf16, #tpu.memory_space<vmem>>, %arg5: memref<8x32xbf16, #tpu.memory_space<vmem>>, %arg6: memref<8x1xf32, #tpu.memory_space<vmem>>, %arg7: memref<2x128xf32, #tpu.memory_space<vmem>>) attributes {dimension_semantics = [#tpu.dimension_semantics<parallel>], iteration_bounds = array<i64: 1>, scalar_prefetch = 0 : i64, scratch_operands = 0 : i64, tpu.core_type = #tpu.core_type<tc>, window_params = [{transform_indices = @transform_0, window_bounds = array<i64: 128, 1>}, {transform_indices = @transform_1, window_bounds = array<i64: 128, 1>}, {pipeline_mode = #tpu.pipeline_mode<synchronous>, transform_indices = @transform_2, window_bounds = array<i64: 16, 32>}, {pipeline_mode = #tpu.pipeline_mode<synchronous>, transform_indices = @transform_3, window_bounds = array<i64: 8, 32>}, {pipeline_mode = #tpu.pipeline_mode<synchronous>, transform_indices = @transform_4, window_bounds = array<i64: 8, 32>}, {pipeline_mode = #tpu.pipeline_mode<synchronous>, transform_indices = @transform_5, window_bounds = array<i64: 8, 1>}, {transform_indices = @transform_6, window_bounds = array<i64: 2, 128>}]} {
    %c0 = arith.constant 0 : index
    %c0_0 = arith.constant 0 : index
    %0 = vector.load %arg3[%c0, %c0_0] : memref<16x32xbf16, #tpu.memory_space<vmem>>, vector<16x32xbf16>
    %c0_1 = arith.constant 0 : index
    %c0_2 = arith.constant 0 : index
    %1 = vector.load %arg1[%c0_1, %c0_2] : memref<128x1xi32, #tpu.memory_space<vmem>>, vector<128x1xi32>
    %2 = tpu.iota {dimensions = array<i32: 1>} : vector<128x16xi32>
    %3 = vector.broadcast %1 : vector<128x1xi32> to vector<128x16xi32>
    %4 = arith.cmpi eq, %2, %3 : vector<128x16xi32>
    %5 = arith.extui %4 : vector<128x16xi1> to vector<128x16xi32>
    %6 = arith.sitofp %5 : vector<128x16xi32> to vector<128x16xf32>
    %7 = arith.truncf %6 : vector<128x16xf32> to vector<128x16xbf16>
    %cst = arith.constant dense<0.000000e+00> : vector<128x32xf32>
    %8 = tpu.matmul %7, %0, %cst {dimension_numbers = #tpu.dot_dimension_numbers<[1], [0], [0], [1], [0, 0, 1, 1], [], []>} : vector<128x16xbf16>, vector<16x32xbf16>, vector<128x32xf32> -> vector<128x32xf32>
    %9 = arith.truncf %8 : vector<128x32xf32> to vector<128x32xbf16>
    %c0_3 = arith.constant 0 : index
    %c0_4 = arith.constant 0 : index
    %10 = vector.load %arg2[%c0_3, %c0_4] : memref<128x1xi32, #tpu.memory_space<vmem>>, vector<128x1xi32>
    %11 = tpu.iota {dimensions = array<i32: 1>} : vector<128x16xi32>
    %12 = vector.broadcast %10 : vector<128x1xi32> to vector<128x16xi32>
    %13 = arith.cmpi eq, %11, %12 : vector<128x16xi32>
    %14 = arith.extui %13 : vector<128x16xi1> to vector<128x16xi32>
    %15 = arith.sitofp %14 : vector<128x16xi32> to vector<128x16xf32>
    %16 = arith.truncf %15 : vector<128x16xf32> to vector<128x16xbf16>
    %cst_5 = arith.constant dense<0.000000e+00> : vector<128x32xf32>
    %17 = tpu.matmul %16, %0, %cst_5 {dimension_numbers = #tpu.dot_dimension_numbers<[1], [0], [0], [1], [0, 0, 1, 1], [], []>} : vector<128x16xbf16>, vector<16x32xbf16>, vector<128x32xf32> -> vector<128x32xf32>
    %18 = arith.truncf %17 : vector<128x32xf32> to vector<128x32xbf16>
    %c0_6 = arith.constant 0 : index
    %c0_7 = arith.constant 0 : index
    %19 = vector.load %arg4[%c0_6, %c0_7] : memref<8x32xbf16, #tpu.memory_space<vmem>>, vector<8x32xbf16>
    %c0_8 = arith.constant 0 : index
    %c0_9 = arith.constant 0 : index
    %20 = vector.load %arg5[%c0_8, %c0_9] : memref<8x32xbf16, #tpu.memory_space<vmem>>, vector<8x32xbf16>
    %c0_10 = arith.constant 0 : index
    %c0_11 = arith.constant 0 : index
    %21 = vector.load %arg6[%c0_10, %c0_11] : memref<8x1xf32, #tpu.memory_space<vmem>>, vector<8x1xf32>
    %cst_12 = arith.constant dense<0.000000e+00> : vector<8x128xf32>
    %22 = tpu.matmul %19, %9, %cst_12 {dimension_numbers = #tpu.dot_dimension_numbers<[1], [1], [0], [0], [0, 0, 1, 0], [], []>} : vector<8x32xbf16>, vector<128x32xbf16>, vector<8x128xf32> -> vector<8x128xf32>
    %cst_13 = arith.constant dense<0.000000e+00> : vector<8x128xf32>
    %23 = tpu.matmul %20, %18, %cst_13 {dimension_numbers = #tpu.dot_dimension_numbers<[1], [1], [0], [0], [0, 0, 1, 0], [], []>} : vector<8x32xbf16>, vector<128x32xbf16>, vector<8x128xf32> -> vector<8x128xf32>
    %24 = arith.addf %22, %23 : vector<8x128xf32>
    %25 = vector.broadcast %21 : vector<8x1xf32> to vector<8x128xf32>
    %26 = arith.addf %24, %25 : vector<8x128xf32>
    %27 = vector.extract_strided_slice %26 {offsets = [0, 0], sizes = [2, 128], strides = [1, 1]} : vector<8x128xf32> to vector<2x128xf32>
    %cst_14 = arith.constant dense<0xFF800000> : vector<128xf32>
    %28 = vector.multi_reduction <maximumf>, %27, %cst_14 [0] : vector<2x128xf32> to vector<128xf32>
    %29 = vector.shape_cast %28 : vector<128xf32> to vector<1x128xf32>
    %30 = vector.broadcast %29 : vector<1x128xf32> to vector<2x128xf32>
    %31 = arith.subf %27, %30 : vector<2x128xf32>
    %32 = math.exp %31 : vector<2x128xf32>
    %cst_15 = arith.constant dense<0.000000e+00> : vector<128xf32>
    %33 = vector.multi_reduction <add>, %32, %cst_15 [0] : vector<2x128xf32> to vector<128xf32>
    %34 = vector.shape_cast %33 : vector<128xf32> to vector<1x128xf32>
    %35 = math.log %34 : vector<1x128xf32>
    %36 = vector.broadcast %35 : vector<1x128xf32> to vector<2x128xf32>
    %37 = arith.subf %31, %36 : vector<2x128xf32>
    %c0_16 = arith.constant 0 : index
    %c0_17 = arith.constant 0 : index
    %38 = vector.load %arg7[%c0_16, %c0_17] : memref<2x128xf32, #tpu.memory_space<vmem>>, vector<2x128xf32>
    tpu.vector_store %arg7[%c0_16, %c0_17], %37 {strides = array<i32>} : memref<2x128xf32, #tpu.memory_space<vmem>>, vector<2x128xf32>,
    return
  }
  func.func @transform_0(%arg0: i32) -> (i32, i32) {
    %c0_i32 = arith.constant 0 : i32
    %c0_i32_0 = arith.constant 0 : i32
    return %arg0, %c0_i32 : i32, i32
  }
  func.func @transform_1(%arg0: i32) -> (i32, i32) {
    %c0_i32 = arith.constant 0 : i32
    %c0_i32_0 = arith.constant 0 : i32
    return %arg0, %c0_i32 : i32, i32
  }
  func.func @transform_2(%arg0: i32) -> (i32, i32) {
    %c0_i32 = arith.constant 0 : i32
    %c0_i32_0 = arith.constant 0 : i32
    %c0_i32_1 = arith.constant 0 : i32
    return %c0_i32, %c0_i32_0 : i32, i32
  }
  func.func @transform_3(%arg0: i32) -> (i32, i32) {
    %c0_i32 = arith.constant 0 : i32
    %c0_i32_0 = arith.constant 0 : i32
    %c0_i32_1 = arith.constant 0 : i32
    return %c0_i32, %c0_i32_0 : i32, i32
  }
  func.func @transform_4(%arg0: i32) -> (i32, i32) {
    %c0_i32 = arith.constant 0 : i32
    %c0_i32_0 = arith.constant 0 : i32
    %c0_i32_1 = arith.constant 0 : i32
    return %c0_i32, %c0_i32_0 : i32, i32
  }
  func.func @transform_5(%arg0: i32) -> (i32, i32) {
    %c0_i32 = arith.constant 0 : i32
    %c0_i32_0 = arith.constant 0 : i32
    %c0_i32_1 = arith.constant 0 : i32
    return %c0_i32, %c0_i32_0 : i32, i32
  }
  func.func @transform_6(%arg0: i32) -> (i32, i32) {
    %c0_i32 = arith.constant 0 : i32
    %c0_i32_0 = arith.constant 0 : i32
    return %c0_i32, %arg0 : i32, i32
  }
}

module attributes {stable_mosaic.version = 11 : i64} {
  func.func @_unfused_kernel(%arg0: i32, %arg1: memref<128x32xbf16, #tpu.memory_space<vmem>>, %arg2: memref<128x32xbf16, #tpu.memory_space<vmem>>, %arg3: memref<8x32xbf16, #tpu.memory_space<vmem>>, %arg4: memref<8x32xbf16, #tpu.memory_space<vmem>>, %arg5: memref<8x1xf32, #tpu.memory_space<vmem>>, %arg6: memref<2x128xf32, #tpu.memory_space<vmem>>) attributes {dimension_semantics = [#tpu.dimension_semantics<parallel>], iteration_bounds = array<i64: 1>, scalar_prefetch = 0 : i64, scratch_operands = 0 : i64, tpu.core_type = #tpu.core_type<tc>, window_params = [{transform_indices = @transform_0, window_bounds = array<i64: 128, 32>}, {transform_indices = @transform_1, window_bounds = array<i64: 128, 32>}, {pipeline_mode = #tpu.pipeline_mode<synchronous>, transform_indices = @transform_2, window_bounds = array<i64: 8, 32>}, {pipeline_mode = #tpu.pipeline_mode<synchronous>, transform_indices = @transform_3, window_bounds = array<i64: 8, 32>}, {pipeline_mode = #tpu.pipeline_mode<synchronous>, transform_indices = @transform_4, window_bounds = array<i64: 8, 1>}, {transform_indices = @transform_5, window_bounds = array<i64: 2, 128>}]} {
    %c0 = arith.constant 0 : index
    %c0_0 = arith.constant 0 : index
    %0 = vector.load %arg1[%c0, %c0_0] : memref<128x32xbf16, #tpu.memory_space<vmem>>, vector<128x32xbf16>
    %c0_1 = arith.constant 0 : index
    %c0_2 = arith.constant 0 : index
    %1 = vector.load %arg2[%c0_1, %c0_2] : memref<128x32xbf16, #tpu.memory_space<vmem>>, vector<128x32xbf16>
    %c0_3 = arith.constant 0 : index
    %c0_4 = arith.constant 0 : index
    %2 = vector.load %arg3[%c0_3, %c0_4] : memref<8x32xbf16, #tpu.memory_space<vmem>>, vector<8x32xbf16>
    %c0_5 = arith.constant 0 : index
    %c0_6 = arith.constant 0 : index
    %3 = vector.load %arg4[%c0_5, %c0_6] : memref<8x32xbf16, #tpu.memory_space<vmem>>, vector<8x32xbf16>
    %c0_7 = arith.constant 0 : index
    %c0_8 = arith.constant 0 : index
    %4 = vector.load %arg5[%c0_7, %c0_8] : memref<8x1xf32, #tpu.memory_space<vmem>>, vector<8x1xf32>
    %cst = arith.constant dense<0.000000e+00> : vector<8x128xf32>
    %5 = tpu.matmul %2, %0, %cst {dimension_numbers = #tpu.dot_dimension_numbers<[1], [1], [0], [0], [0, 0, 1, 0], [], []>} : vector<8x32xbf16>, vector<128x32xbf16>, vector<8x128xf32> -> vector<8x128xf32>
    %cst_9 = arith.constant dense<0.000000e+00> : vector<8x128xf32>
    %6 = tpu.matmul %3, %1, %cst_9 {dimension_numbers = #tpu.dot_dimension_numbers<[1], [1], [0], [0], [0, 0, 1, 0], [], []>} : vector<8x32xbf16>, vector<128x32xbf16>, vector<8x128xf32> -> vector<8x128xf32>
    %7 = arith.addf %5, %6 : vector<8x128xf32>
    %8 = vector.broadcast %4 : vector<8x1xf32> to vector<8x128xf32>
    %9 = arith.addf %7, %8 : vector<8x128xf32>
    %10 = vector.extract_strided_slice %9 {offsets = [0, 0], sizes = [2, 128], strides = [1, 1]} : vector<8x128xf32> to vector<2x128xf32>
    %cst_10 = arith.constant dense<0xFF800000> : vector<128xf32>
    %11 = vector.multi_reduction <maximumf>, %10, %cst_10 [0] : vector<2x128xf32> to vector<128xf32>
    %12 = vector.shape_cast %11 : vector<128xf32> to vector<1x128xf32>
    %13 = vector.broadcast %12 : vector<1x128xf32> to vector<2x128xf32>
    %14 = arith.subf %10, %13 : vector<2x128xf32>
    %15 = math.exp %14 : vector<2x128xf32>
    %cst_11 = arith.constant dense<0.000000e+00> : vector<128xf32>
    %16 = vector.multi_reduction <add>, %15, %cst_11 [0] : vector<2x128xf32> to vector<128xf32>
    %17 = vector.shape_cast %16 : vector<128xf32> to vector<1x128xf32>
    %18 = math.log %17 : vector<1x128xf32>
    %19 = vector.broadcast %18 : vector<1x128xf32> to vector<2x128xf32>
    %20 = arith.subf %14, %19 : vector<2x128xf32>
    %c0_12 = arith.constant 0 : index
    %c0_13 = arith.constant 0 : index
    %21 = vector.load %arg6[%c0_12, %c0_13] : memref<2x128xf32, #tpu.memory_space<vmem>>, vector<2x128xf32>
    tpu.vector_store %arg6[%c0_12, %c0_13], %20 {strides = array<i32>} : memref<2x128xf32, #tpu.memory_space<vmem>>, vector<2x128xf32>,
    return
  }
  func.func @transform_0(%arg0: i32) -> (i32, i32) {
    %c0_i32 = arith.constant 0 : i32
    %c0_i32_0 = arith.constant 0 : i32
    return %arg0, %c0_i32 : i32, i32
  }
  func.func @transform_1(%arg0: i32) -> (i32, i32) {
    %c0_i32 = arith.constant 0 : i32
    %c0_i32_0 = arith.constant 0 : i32
    return %arg0, %c0_i32 : i32, i32
  }
  func.func @transform_2(%arg0: i32) -> (i32, i32) {
    %c0_i32 = arith.constant 0 : i32
    %c0_i32_0 = arith.constant 0 : i32
    %c0_i32_1 = arith.constant 0 : i32
    return %c0_i32, %c0_i32_0 : i32, i32
  }
  func.func @transform_3(%arg0: i32) -> (i32, i32) {
    %c0_i32 = arith.constant 0 : i32
    %c0_i32_0 = arith.constant 0 : i32
    %c0_i32_1 = arith.constant 0 : i32
    return %c0_i32, %c0_i32_0 : i32, i32
  }
  func.func @transform_4(%arg0: i32) -> (i32, i32) {
    %c0_i32 = arith.constant 0 : i32
    %c0_i32_0 = arith.constant 0 : i32
    %c0_i32_1 = arith.constant 0 : i32
    return %c0_i32, %c0_i32_0 : i32, i32
  }
  func.func @transform_5(%arg0: i32) -> (i32, i32) {
    %c0_i32 = arith.constant 0 : i32
    %c0_i32_0 = arith.constant 0 : i32
    return %c0_i32, %arg0 : i32, i32
  }
}

</mosaic_0001>

<bundles_post_ra>
// kernel: tpu_custom_call.1
= control target key start
LH: loop header
LB: loop body
LE: loop exit
PB: predicated region body
PF: predicated region fallthrough
CT: control target
= control target key end

     0   :  { %v910_v2 = vmov 0   ;;  %s1225_s0 = inlined_call_operand.vmem [shape: s32[128,1], index: 0, kind: input, shape index: {}]   ;;  %s1226_s1 = inlined_call_operand.vmem [shape: s32[128,1], index: 1, kind: input, shape index: {}]   ;;  %s1227_s2 = inlined_call_operand.vmem [shape: bf16[16,32], index: 2, kind: input, shape index: {}]   ;;  %s1228_s3 = inlined_call_operand.vmem [shape: bf16[8,32], index: 3, kind: input, shape index: {}]   ;;  %s1229_s4 = inlined_call_operand.vmem [shape: bf16[8,32], index: 4, kind: input, shape index: {}]   ;;  %s1230_s5 = inlined_call_operand.vmem [shape: f32[8,1], index: 5, kind: input, shape index: {}]   ;;  %s1231_s6 = inlined_call_operand.hbm [shape: f32[2,128], index: 6, kind: output, shape index: {}]  }
   0x1   :  { %v285_v0 = vld [vmem:[%s1226_s1] sm:$0xff]  ;;  %882 = vset.pattern.permute.xlu1 %v910_v2  ;;  %881 = vset.pattern.permute.xlu0 %v910_v2  ;;  %v286_v3 = vld [vmem:[%s1226_s1 + $0x8] sm:$0xff]  ;;  %v30_v5 = vld [vmem:[%s1225_s0 + $0x18] sm:$0xff] }
   0x2   :  { %v27_v1 = vld [vmem:[%s1225_s0] sm:$0xff]  ;;  %302 = vperm.xlu1 %882, %v285_v0   ;;  %v28_v4 = vld [vmem:[%s1225_s0 + $0x8] sm:$0xff]  ;;  %v29_v6 = vld [vmem:[%s1225_s0 + $0x10] sm:$0xff] }
   0x3   :  { %46 = vperm.xlu0 %881, %v27_v1   ;;  %v288_v7 = vld [vmem:[%s1226_s1 + $0x18] sm:$0xff]  ;;  %v287_v8 = vld [vmem:[%s1226_s1 + $0x10] sm:$0xff]  ;;  %v883_v9 = vld [vmem:[%s1227_s2] sm:$0xff]  }
   0x6   :  { %305 = vperm.xlu1 %882, %v286_v3  }
   0x7   :  { %49 = vperm.xlu0 %881, %v28_v4  }
   0xa   :  { %55 = vperm.xlu1 %882, %v30_v5  }
   0xb   :  { %52 = vperm.xlu0 %881, %v29_v6  }
   0xc   :  { %11 = vsyncpa [#allocation3], 0  ;;  %801 = vmatprep.subr.bf16.mxu0 %v883_v9  ;;  %819 = vmatprep.subr.bf16.mxu1 %v883_v9  ;;  %v32_v10 = vld [vmem:[%s1225_s0 + $0x28] sm:$0xff]  ;;  %v31_v11 = vld [vmem:[%s1225_s0 + $0x20] sm:$0xff]  ;;  %v911_v12 = vmov 0.0   ;;  %v43_v36 = vlaneseq  ;;  %vm155_vm4 = vcmask 130048  }
   0xd   :  { %802 = vmatpush3.bf16.msra.mxu0 %v883_v9  ;;  %820 = vmatpush3.bf16.msra.mxu1 %v883_v9  ;;  %v290_v13 = vld [vmem:[%s1226_s1 + $0x28] sm:$0xff]  ;;  %v289_v14 = vld [vmem:[%s1226_s1 + $0x20] sm:$0xff]  ;;  %v34_v15 = vld [vmem:[%s1225_s0 + $0x38] sm:$0xff] }
   0xe   :  { %311 = vperm.xlu1 %882, %v288_v7   ;;  %857 = vmatprep.subr.bf16.mxu1 %v911_v12  ;;  %v33_v16 = vld [vmem:[%s1225_s0 + $0x30] sm:$0xff]  ;;  %v292_v17 = vld [vmem:[%s1226_s1 + $0x38] sm:$0xff]  ;;  %v36_v19 = vld [vmem:[%s1225_s0 + $0x48] sm:$0xff]  ;;  %v1053_v37 = vand.u32 127, %v43_v36 }
   0xf   :  { %308 = vperm.xlu0 %881, %v287_v8   ;;  %837 = vmatprep.subr.bf16.mxu0 %v911_v12  ;;  %v291_v18 = vld [vmem:[%s1226_s1 + $0x30] sm:$0xff]  ;;  %v35_v20 = vld [vmem:[%s1225_s0 + $0x40] sm:$0xff]  ;;  %v294_v21 = vld [vmem:[%s1226_s1 + $0x48] sm:$0xff] }
  0x10   :  { %v293_v22 = vld [vmem:[%s1226_s1 + $0x40] sm:$0xff]  ;;  %v38_v23 = vld [vmem:[%s1225_s0 + $0x58] sm:$0xff]  ;;  %v37_v24 = vld [vmem:[%s1225_s0 + $0x50] sm:$0xff] }
  0x11   :  { %v296_v25 = vld [vmem:[%s1226_s1 + $0x58] sm:$0xff]  ;;  %v295_v26 = vld [vmem:[%s1226_s1 + $0x50] sm:$0xff]  ;;  %v40_v27 = vld [vmem:[%s1225_s0 + $0x68] sm:$0xff] }
  0x12   :  { %61 = vperm.xlu1 %882, %v32_v10   ;;  %v39_v28 = vld [vmem:[%s1225_s0 + $0x60] sm:$0xff]  ;;  %v298_v29 = vld [vmem:[%s1226_s1 + $0x68] sm:$0xff]  ;;  %v42_v31 = vld [vmem:[%s1225_s0 + $0x78] sm:$0xff] }
  0x13   :  { %58 = vperm.xlu0 %881, %v31_v11   ;;  %v297_v30 = vld [vmem:[%s1226_s1 + $0x60] sm:$0xff]  ;;  %v41_v32 = vld [vmem:[%s1225_s0 + $0x70] sm:$0xff]  ;;  %v300_v33 = vld [vmem:[%s1226_s1 + $0x78] sm:$0xff] }
  0x14   :  { %v299_v34 = vld [vmem:[%s1226_s1 + $0x70] sm:$0xff]  ;;  %v536_v35 = vld [vmem:[%s1230_s5] sm:$0xff] }
  0x16   :  { %317 = vperm.xlu1 %882, %v290_v13  }
  0x17   :  { %314 = vperm.xlu0 %881, %v289_v14  }
  0x1a   :  { %67 = vperm.xlu1 %882, %v34_v15  }
  0x1b   :  { %64 = vperm.xlu0 %881, %v33_v16  }
  0x1e   :  { %323 = vperm.xlu1 %882, %v292_v17  }
  0x1f   :  { %320 = vperm.xlu0 %881, %v291_v18  }
  0x22   :  { %73 = vperm.xlu1 %882, %v36_v19  }
  0x23   :  { %70 = vperm.xlu0 %881, %v35_v20  }
  0x26   :  { %329 = vperm.xlu1 %882, %v294_v21  }
  0x27   :  { %326 = vperm.xlu0 %881, %v293_v22  }
  0x2a   :  { %79 = vperm.xlu1 %882, %v38_v23  }
  0x2b   :  { %76 = vperm.xlu0 %881, %v37_v24  }
  0x2e   :  { %335 = vperm.xlu1 %882, %v296_v25  }
  0x2f   :  { %332 = vperm.xlu0 %881, %v295_v26  }
  0x32   :  { %85 = vperm.xlu1 %882, %v40_v27  }
  0x33   :  { %82 = vperm.xlu0 %881, %v39_v28  }
  0x36   :  { %341 = vperm.xlu1 %882, %v298_v29  }
  0x37   :  { %338 = vperm.xlu0 %881, %v297_v30  }
  0x3a   :  { %91 = vperm.xlu1 %882, %v42_v31  }
  0x3b   :  { %88 = vperm.xlu0 %881, %v41_v32  }
  0x3e   :  { %347 = vperm.xlu1 %882, %v300_v33  }
  0x3f   :  { %344 = vperm.xlu0 %881, %v299_v34  }
  0x43   :  { %674 = vperm.xlu0 %881, %v536_v35  }
  0x7d   :  { %v303_v38 = vpop.permute.xlu1 %302 }
  0x7e   :  { %v47_v39 = vpop.permute.xlu0 %46  ;;  %vm349_vm0 = vcmp.eq.s32.totalorder %v1053_v37, %v303_v38 }
  0x7f   :  { %vm93_vm1 = vcmp.eq.s32.totalorder %v1053_v37, %v47_v39  ;;  %v739_v42 = vsel %vm349_vm0, 1.0, %v911_v12 }
  0x80   :  { %v714_v43 = vsel %vm93_vm1, 1.0, %v911_v12 }
  0x81   :  { %v306_v40 = vpop.permute.xlu1 %305 }
  0x82   :  { %v50_v41 = vpop.permute.xlu0 %49  ;;  %vm350_vm2 = vcmp.eq.s32.totalorder %v1053_v37, %v306_v40 }
  0x83   :  { %vm94_vm3 = vcmp.eq.s32.totalorder %v1053_v37, %v50_v41  ;;  %v740_v44 = vsel %vm350_vm2, 1.0, %v911_v12 }
  0x84   :  { %v715_v45 = vsel %vm94_vm3, 1.0, %v911_v12  ;;  %v397_v47 = vpack.c.bf16 %v740_v44, %v739_v42 }
  0x85   :  { %v141_v46 = vpack.c.bf16 %v715_v45, %v714_v43  ;;  %v56_v48 = vpop.permute.xlu1 %55 }
  0x86   :  { %v53_v49 = vpop.permute.xlu0 %52  ;;  %vm96_vm5 = vcmp.eq.s32.totalorder %v1053_v37, %v56_v48  ;;  %821 = vmatprep.mubr.msk.bf16.mxu1 %vm155_vm4, %v397_v47 }
  0x87   :  { %vm95_vm6 = vcmp.eq.s32.totalorder %v1053_v37, %v53_v49  ;;  %803 = vmatprep.mubr.msk.bf16.mxu0 %vm155_vm4, %v141_v46  ;;  %v717_v50 = vsel %vm96_vm5, 1.0, %v911_v12 }
  0x88   :  { %v716_v51 = vsel %vm95_vm6, 1.0, %v911_v12 }
  0x89   :  { %v142_v52 = vpack.c.bf16 %v717_v50, %v716_v51  ;;  %v312_v53 = vpop.permute.xlu1 %311 }
  0x8a   :  { %v309_v54 = vpop.permute.xlu0 %308  ;;  %vm352_vm7 = vcmp.eq.s32.totalorder %v1053_v37, %v312_v53 }
  0x8b   :  { %vm351_vm8 = vcmp.eq.s32.totalorder %v1053_v37, %v309_v54  ;;  %804 = vmatmul.mubr.msk.bf16.vlgmr.msra.gmra.mxu0 %vm155_vm4, %v142_v52  ;;  %v742_v55 = vsel %vm352_vm7, 1.0, %v911_v12 }
  0x8c   :  { %v741_v56 = vsel %vm351_vm8, 1.0, %v911_v12 }
  0x8d   :  { %v398_v57 = vpack.c.bf16 %v742_v55, %v741_v56  ;;  %v62_v58 = vpop.permute.xlu1 %61 }
  0x8e   :  { %v59_v59 = vpop.permute.xlu0 %58  ;;  %vm98_vm9 = vcmp.eq.s32.totalorder %v1053_v37, %v62_v58 }
  0x8f   :  { %vm97_vm10 = vcmp.eq.s32.totalorder %v1053_v37, %v59_v59  ;;  %822 = vmatmul.mubr.msk.bf16.vlgmr.msra.gmra.mxu1 %vm155_vm4, %v398_v57  ;;  %v719_v60 = vsel %vm98_vm9, 1.0, %v911_v12 }
  0x90   :  { %v718_v61 = vsel %vm97_vm10, 1.0, %v911_v12 }
  0x91   :  { %v143_v62 = vpack.c.bf16 %v719_v60, %v718_v61  ;;  %v318_v63 = vpop.permute.xlu1 %317 }
  0x92   :  { %v315_v0 = vpop.permute.xlu0 %314  ;;  %vm354_vm11 = vcmp.eq.s32.totalorder %v1053_v37, %v318_v63 }
  0x93   :  { %vm353_vm12 = vcmp.eq.s32.totalorder %v1053_v37, %v315_v0  ;;  %807 = vmatprep.mubr.msk.bf16.mxu0 %vm155_vm4, %v143_v62  ;;  %v744_v1 = vsel %vm354_vm11, 1.0, %v911_v12 }
  0x94   :  { %v743_v2 = vsel %vm353_vm12, 1.0, %v911_v12 }
  0x95   :  { %v399_v3 = vpack.c.bf16 %v744_v1, %v743_v2  ;;  %v68_v4 = vpop.permute.xlu1 %67 }
  0x96   :  { %v65_v5 = vpop.permute.xlu0 %64  ;;  %vm100_vm13 = vcmp.eq.s32.totalorder %v1053_v37, %v68_v4 }
  0x97   :  { %vm99_vm14 = vcmp.eq.s32.totalorder %v1053_v37, %v65_v5  ;;  %825 = vmatprep.mubr.msk.bf16.mxu1 %vm155_vm4, %v399_v3  ;;  %v721_v6 = vsel %vm100_vm13, 1.0, %v911_v12 }
  0x98   :  { %v720_v7 = vsel %vm99_vm14, 1.0, %v911_v12 }
  0x99   :  { %v144_v8 = vpack.c.bf16 %v721_v6, %v720_v7  ;;  %v324_v9 = vpop.permute.xlu1 %323 }
  0x9a   :  { %v321_v10 = vpop.permute.xlu0 %320  ;;  %vm356_vm15 = vcmp.eq.s32.totalorder %v1053_v37, %v324_v9 }
  0x9b   :  { %vm355_vm0 = vcmp.eq.s32.totalorder %v1053_v37, %v321_v10  ;;  %808 = vmatmul.mubr.msk.bf16.gmra.mxu0 %vm155_vm4, %v144_v8  ;;  %v746_v11 = vsel %vm356_vm15, 1.0, %v911_v12 }
  0x9c   :  { %v745_v13 = vsel %vm355_vm0, 1.0, %v911_v12 }
  0x9d   :  { %v400_v14 = vpack.c.bf16 %v746_v11, %v745_v13  ;;  %v74_v15 = vpop.permute.xlu1 %73 }
  0x9e   :  { %v71_v16 = vpop.permute.xlu0 %70  ;;  %vm102_vm1 = vcmp.eq.s32.totalorder %v1053_v37, %v74_v15 }
  0x9f   :  { %vm101_vm2 = vcmp.eq.s32.totalorder %v1053_v37, %v71_v16  ;;  %826 = vmatmul.mubr.msk.bf16.gmra.mxu1 %vm155_vm4, %v400_v14  ;;  %v723_v17 = vsel %vm102_vm1, 1.0, %v911_v12 }
  0xa0   :  { %v722_v18 = vsel %vm101_vm2, 1.0, %v911_v12  ;;  %vm912_vm2 = vmmov 0  }
  0xa1   :  { %v145_v19 = vpack.c.bf16 %v723_v17, %v722_v18  ;;  %v330_v20 = vpop.permute.xlu1 %329 }
  0xa2   :  { %v327_v21 = vpop.permute.xlu0 %326  ;;  %vm358_vm3 = vcmp.eq.s32.totalorder %v1053_v37, %v330_v20 }
  0xa3   :  { %vm357_vm5 = vcmp.eq.s32.totalorder %v1053_v37, %v327_v21  ;;  %811 = vmatprep.mubr.msk.bf16.mxu0 %vm155_vm4, %v145_v19  ;;  %v748_v22 = vsel %vm358_vm3, 1.0, %v911_v12  ;;  %vm678_vm3 = vcmask 1041408  }
  0xa4   :  { %v747_v23 = vsel %vm357_vm5, 1.0, %v911_v12 }
  0xa5   :  { %v401_v24 = vpack.c.bf16 %v748_v22, %v747_v23  ;;  %v80_v25 = vpop.permute.xlu1 %79 }
  0xa6   :  { %v77_v26 = vpop.permute.xlu0 %76  ;;  %vm104_vm6 = vcmp.eq.s32.totalorder %v1053_v37, %v80_v25 }
  0xa7   :  { %vm103_vm7 = vcmp.eq.s32.totalorder %v1053_v37, %v77_v26  ;;  %829 = vmatprep.mubr.msk.bf16.mxu1 %vm155_vm4, %v401_v24  ;;  %v725_v27 = vsel %vm104_vm6, 1.0, %v911_v12 }
  0xa8   :  { %v724_v28 = vsel %vm103_vm7, 1.0, %v911_v12 }
  0xa9   :  { %v146_v29 = vpack.c.bf16 %v725_v27, %v724_v28  ;;  %v336_v30 = vpop.permute.xlu1 %335 }
  0xaa   :  { %v333_v31 = vpop.permute.xlu0 %332  ;;  %vm360_vm8 = vcmp.eq.s32.totalorder %v1053_v37, %v336_v30 }
  0xab   :  { %vm359_vm9 = vcmp.eq.s32.totalorder %v1053_v37, %v333_v31  ;;  %812 = vmatmul.mubr.msk.bf16.gmra.mxu0 %vm155_vm4, %v146_v29  ;;  %v750_v32 = vsel %vm360_vm8, 1.0, %v911_v12 }
  0xac   :  { %v749_v33 = vsel %vm359_vm9, 1.0, %v911_v12 }
  0xad   :  { %v402_v34 = vpack.c.bf16 %v750_v32, %v749_v33  ;;  %v86_v35 = vpop.permute.xlu1 %85 }
  0xae   :  { %v83_v36 = vpop.permute.xlu0 %82  ;;  %vm106_vm10 = vcmp.eq.s32.totalorder %v1053_v37, %v86_v35 }
  0xaf   :  { %vm105_vm11 = vcmp.eq.s32.totalorder %v1053_v37, %v83_v36  ;;  %830 = vmatmul.mubr.msk.bf16.gmra.mxu1 %vm155_vm4, %v402_v34  ;;  %v727_v38 = vsel %vm106_vm10, 1.0, %v911_v12 }
  0xb0   :  { %v726_v39 = vsel %vm105_vm11, 1.0, %v911_v12 }
  0xb1   :  { %v147_v40 = vpack.c.bf16 %v727_v38, %v726_v39  ;;  %v342_v41 = vpop.permute.xlu1 %341 }
  0xb2   :  { %v339_v42 = vpop.permute.xlu0 %338  ;;  %vm362_vm12 = vcmp.eq.s32.totalorder %v1053_v37, %v342_v41 }
  0xb3   :  { %vm361_vm13 = vcmp.eq.s32.totalorder %v1053_v37, %v339_v42  ;;  %815 = vmatprep.mubr.msk.bf16.mxu0 %vm155_vm4, %v147_v40  ;;  %v752_v43 = vsel %vm362_vm12, 1.0, %v911_v12 }
  0xb4   :  { %v751_v44 = vsel %vm361_vm13, 1.0, %v911_v12 }
  0xb5   :  { %v403_v45 = vpack.c.bf16 %v752_v43, %v751_v44  ;;  %v92_v46 = vpop.permute.xlu1 %91 }
  0xb6   :  { %v89_v47 = vpop.permute.xlu0 %88  ;;  %vm108_vm14 = vcmp.eq.s32.totalorder %v1053_v37, %v92_v46 }
  0xb7   :  { %vm107_vm15 = vcmp.eq.s32.totalorder %v1053_v37, %v89_v47  ;;  %833 = vmatprep.mubr.msk.bf16.mxu1 %vm155_vm4, %v403_v45  ;;  %v729_v48 = vsel %vm108_vm14, 1.0, %v911_v12 }
  0xb8   :  { %v728_v49 = vsel %vm107_vm15, 1.0, %v911_v12 }
  0xb9   :  { %v148_v50 = vpack.c.bf16 %v729_v48, %v728_v49  ;;  %v348_v51 = vpop.permute.xlu1 %347 }
  0xba   :  { %v345_v52 = vpop.permute.xlu0 %344  ;;  %vm364_vm0 = vcmp.eq.s32.totalorder %v1053_v37, %v348_v51 }
  0xbb   :  { %vm363_vm1 = vcmp.eq.s32.totalorder %v1053_v37, %v345_v52  ;;  %816 = vmatmul.mubr.msk.bf16.gmra.mxu0 %vm155_vm4, %v148_v50  ;;  %v754_v53 = vsel %vm364_vm0, 1.0, %v911_v12 }
  0xbc   :  { %v753_v54 = vsel %vm363_vm1, 1.0, %v911_v12  ;;  %853 = vmatprep.mubr.msk.bf16.mxu0 %vm912_vm2, %v911_v12 }
  0xbd   :  { %v404_v55 = vpack.c.bf16 %v754_v53, %v753_v54 }
  0xbf   :  { %834 = vmatmul.mubr.msk.bf16.gmra.mxu1 %vm155_vm4, %v404_v55  ;;  %vm537_vm4 = vcmask 261120  }
  0xc0   :  { %873 = vmatprep.mubr.msk.bf16.mxu1 %vm912_vm2, %v911_v12 }
 0x14b   :  { %v1137_v56 = vpop.f32.mrf.mxu0 }
 0x14d   :  { %v1139_v57 = vpop.f32.mrf.mxu0 }
 0x14f   :  { %v1141_v58 = vpop.f32.mrf.mxu0  ;;  %v1143_v37 = vpop.f32.mrf.mxu1 }
 0x150   :  { %v278_v59 = vpack.c.bf16 %v1141_v58, %v1137_v56  ;;  %v534_v58 = vld [vmem:[%s1228_s3] sm:$0xf]  ;;  %s913_s3 = smov [#allocation2]  }
 0x151   :  { %v1147_v60 = vpop.f32.mrf.mxu0  ;;  %v1149_v61 = vpop.f32.mrf.mxu1 }
 0x152   :  { %v277_v62 = vpack.c.bf16 %v1147_v60, %v1139_v57  ;;  %v612_v53 = vsel %vm537_vm4, %v278_v59, 0 }
 0x153   :  { %v1153_v63 = vpop.f32.mrf.mxu1 }
 0x154   :  { %v527_v0 = vpack.c.bf16 %v1153_v63, %v1143_v37  ;;  %v609_v55 = vsel %vm537_vm4, %v277_v62, 0 }
 0x155   :  { %v1157_v1 = vpop.f32.mrf.mxu1 }
 0x156   :  { %v526_v2 = vpack.c.bf16 %v1157_v1, %v1149_v61  ;;  %v545_v54 = vsel %vm537_vm4, %v527_v0, 0  ;;  %v675_v61 = vpop.permute.xlu0 %674 }
 0x158   :  { %v542_v56 = vsel %vm537_vm4, %v526_v2, 0 }
 0x15b   :  { %v809_v3 = vpop.f32.mrf.mxu0 }
 0x15d   :  { %v1161_v4 = vpop.f32.mrf.mxu0 }
 0x15f   :  { %v827_v5 = vpop.f32.mrf.mxu1  ;;  %v810_v6 = vpop.f32.mrf.mxu0 }
 0x160   :  { %v280_v44 = vpack.c.bf16 %v810_v6, %v809_v3 }
 0x161   :  { %v1163_v7 = vpop.f32.mrf.mxu1  ;;  %v233_v8 = vpop.f32.mrf.mxu0 }
 0x162   :  { %v618_v46 = vsel %vm537_vm4, %v280_v44, 0  ;;  %v279_v48 = vpack.c.bf16 %v233_v8, %v1161_v4 }
 0x163   :  { %v828_v9 = vpop.f32.mrf.mxu1 }
 0x164   :  { %v529_v47 = vpack.c.bf16 %v828_v9, %v827_v5  ;;  %v615_v50 = vsel %vm537_vm4, %v279_v48, 0 }
 0x165   :  { %v1165_v11 = vpop.f32.mrf.mxu1 }
 0x166   :  { %v551_v49 = vsel %vm537_vm4, %v529_v47, 0  ;;  %v528_v51 = vpack.c.bf16 %v1165_v11, %v1163_v7 }
 0x168   :  { %v548_v52 = vsel %vm537_vm4, %v528_v51, 0 }
 0x16b   :  { %v813_v10 = vpop.f32.mrf.mxu0 }
 0x16d   :  { %v246_v13 = vpop.f32.mrf.mxu0 }
 0x16f   :  { %v831_v14 = vpop.f32.mrf.mxu1  ;;  %v814_v15 = vpop.f32.mrf.mxu0 }
 0x170   :  { %v282_v35 = vpack.c.bf16 %v814_v15, %v813_v10 }
 0x171   :  { %v495_v16 = vpop.f32.mrf.mxu1  ;;  %v249_v17 = vpop.f32.mrf.mxu0 }
 0x172   :  { %v624_v38 = vsel %vm537_vm4, %v282_v35, 0  ;;  %v281_v40 = vpack.c.bf16 %v249_v17, %v246_v13 }
 0x173   :  { %v832_v18 = vpop.f32.mrf.mxu1 }
 0x174   :  { %v531_v39 = vpack.c.bf16 %v832_v18, %v831_v14  ;;  %v621_v42 = vsel %vm537_vm4, %v281_v40, 0 }
 0x175   :  { %v498_v20 = vpop.f32.mrf.mxu1 }
 0x176   :  { %v557_v41 = vsel %vm537_vm4, %v531_v39, 0  ;;  %v530_v43 = vpack.c.bf16 %v498_v20, %v495_v16 }
 0x178   :  { %v554_v45 = vsel %vm537_vm4, %v530_v43, 0 }
 0x17b   :  { %v817_v19 = vpop.f32.mrf.mxu0 }
 0x17d   :  { %v262_v21 = vpop.f32.mrf.mxu0 }
 0x17f   :  { %v818_v22 = vpop.f32.mrf.mxu0  ;;  %v835_v23 = vpop.f32.mrf.mxu1 }
 0x180   :  { %v284_v24 = vpack.c.bf16 %v818_v22, %v817_v19 }
 0x181   :  { %v511_v25 = vpop.f32.mrf.mxu1  ;;  %v265_v27 = vpop.f32.mrf.mxu0 }
 0x182   :  { %v630_v26 = vsel %vm537_vm4, %v284_v24, 0  ;;  %v283_v30 = vpack.c.bf16 %v265_v27, %v262_v21 }
 0x183   :  { %v836_v28 = vpop.f32.mrf.mxu1  ;;  %858 = vmatpush3.bf16.xpose.msra.mxu1 %v630_v26 }
 0x184   :  { %v533_v29 = vpack.c.bf16 %v836_v28, %v835_v23  ;;  %859 = vmatprep.subr.bf16.mxu1 %v911_v12  ;;  %v627_v33 = vsel %vm537_vm4, %v283_v30, 0 }
 0x185   :  { %v514_v32 = vpop.f32.mrf.mxu1 }
 0x186   :  { %v563_v31 = vsel %vm537_vm4, %v533_v29, 0  ;;  %v532_v34 = vpack.c.bf16 %v514_v32, %v511_v25 }
 0x187   :  { %838 = vmatpush3.bf16.xpose.msra.mxu0 %v563_v31 }
 0x188   :  { %839 = vmatprep.subr.bf16.mxu0 %v911_v12  ;;  %v560_v36 = vsel %vm537_vm4, %v532_v34, 0 }
 0x18b   :  { %860 = vmatpush3.bf16.xpose.msra.mxu1 %v627_v33 }
 0x18c   :  { %861 = vmatprep.subr.bf16.mxu1 %v911_v12 }
 0x18f   :  { %840 = vmatpush3.bf16.xpose.msra.mxu0 %v560_v36 }
 0x190   :  { %841 = vmatprep.subr.bf16.mxu0 %v911_v12 }
 0x193   :  { %862 = vmatpush3.bf16.xpose.msra.mxu1 %v624_v38 }
 0x194   :  { %863 = vmatprep.subr.bf16.mxu1 %v911_v12 }
 0x197   :  { %842 = vmatpush3.bf16.xpose.msra.mxu0 %v557_v41 }
 0x198   :  { %843 = vmatprep.subr.bf16.mxu0 %v911_v12 }
 0x19b   :  { %864 = vmatpush3.bf16.xpose.msra.mxu1 %v621_v42 }
 0x19c   :  { %865 = vmatprep.subr.bf16.mxu1 %v911_v12 }
 0x19f   :  { %844 = vmatpush3.bf16.xpose.msra.mxu0 %v554_v45 }
 0x1a0   :  { %845 = vmatprep.subr.bf16.mxu0 %v911_v12 }
 0x1a3   :  { %866 = vmatpush3.bf16.xpose.msra.mxu1 %v618_v46 }
 0x1a4   :  { %867 = vmatprep.subr.bf16.mxu1 %v911_v12 }
 0x1a7   :  { %846 = vmatpush3.bf16.xpose.msra.mxu0 %v551_v49 }
 0x1a8   :  { %847 = vmatprep.subr.bf16.mxu0 %v911_v12 }
 0x1ab   :  { %868 = vmatpush3.bf16.xpose.msra.mxu1 %v615_v50 }
 0x1ac   :  { %869 = vmatprep.subr.bf16.mxu1 %v911_v12 }
 0x1af   :  { %848 = vmatpush3.bf16.xpose.msra.mxu0 %v548_v52 }
 0x1b0   :  { %849 = vmatprep.subr.bf16.mxu0 %v911_v12 }
 0x1b3   :  { %870 = vmatpush3.bf16.xpose.msra.mxu1 %v612_v53 }
 0x1b4   :  { %871 = vmatprep.subr.bf16.mxu1 %v911_v12 }
 0x1b7   :  { %850 = vmatpush3.bf16.xpose.msra.mxu0 %v545_v54 }
 0x1b8   :  { %851 = vmatprep.subr.bf16.mxu0 %v911_v12  ;;  %v535_v12 = vld [vmem:[%s1229_s4] sm:$0xf]  ;;  %s706_s4 = sshll.u32 %s913_s3, 4  ;;  %s707_s4 = int_to_ptr.vmem [resolvable:$true] %s706_s4 }
 0x1b9   :  { %s888_s16 = scalar_lea.vmem %s707_s4, 32  ;;  %p893_p1 = scmp.lt.s32.totalorder %s707_s4, %s707_s4 }
 0x1ba   :  { %p889_p0 = scmp.ne.s32.totalorder %s707_s4, %s888_s16  ;;  %p894_p2 = scmp.lt.s32.totalorder %s888_s16, %s888_s16 }
 0x1bb   :  { %872 = vmatpush3.bf16.xpose.msra.mxu1 %v609_v55 }
 0x1bc   :  { %p895_p3 = por %p894_p2, %p893_p1 }
 0x1be   :  { %p896_p4 = pnand %p895_p3, %p889_p0 }
 0x1bf   :  { %852 = vmatpush3.bf16.xpose.msra.mxu0 %v542_v56 }
 0x1c2   :  { %874 = vmatmul.mubr.msk.bf16.vlgmr.msra.gmra.mxu1 %vm537_vm4, %v534_v58 }
 0x1c6   :  { %854 = vmatmul.mubr.msk.bf16.vlgmr.msra.gmra.mxu0 %vm537_vm4, %v535_v12 }
 0x282   :  { %v666_v57 = vpop.f32.mrf.mxu1 }
 0x284   :  { %v875_v37 = vpop.f32.mrf.mxu1 }
 0x286   :  { %v599_v59 = vpop.f32.mrf.mxu0  ;;  %v669_v60 = vpop.f32.mrf.mxu1 }
 0x287   :  { %v667_v62 = vadd.f32 %v666_v57, %v599_v59 }
 0x288   :  { %v855_v63 = vpop.f32.mrf.mxu0  ;;  %v876_v0 = vpop.f32.mrf.mxu1 }
 0x289   :  { %v677_v1 = vadd.f32 %v675_v61, %v667_v62 }
 0x28a   :  { %v602_v2 = vpop.f32.mrf.mxu0 }
 0x28b   :  { %v679_v3 = vsel %vm678_vm3, %v677_v1, -inf }
 0x28c   :  { %v680_v4 = vrot.slane %v679_v3, 4  ;;  %v856_v5 = vpop.f32.mrf.mxu0 }
 0x28e   :  { %v681_v6 = vmax.f32 %v679_v3, %v680_v4 }
 0x290   :  { %v682_v7 = vrot.slane %v681_v6, 2 }
 0x292   :  { %v683_v8 = vmax.f32 %v681_v6, %v682_v7 }
 0x294   :  { %v684_v9 = vrot.slane %v683_v8, 1 }
 0x296   :  { %v685_v10 = vmax.f32 %v683_v8, %v684_v9 }
 0x298   :  { %v686_v11 = vsub.f32 %v677_v1, %v685_v10 }
 0x29a   :  { %v687_v13 = vmul.f32 1.442695, %v686_v11 }
 0x29c   :  { %884 = vpow2.f32 %v687_v13 }
 0x2a9   :  { %v885_v14 = vpop.eup %884 }
 0x2aa   :  { %v689_v15 = vsel %vm678_vm3, %v885_v14, 0.0 }
 0x2ab   :  { %v690_v16 = vrot.slane %v689_v15, 4 }
 0x2ad   :  { %v691_v17 = vadd.f32 %v690_v16, %v689_v15 }
 0x2af   :  { %v692_v18 = vrot.slane %v691_v17, 2 }
 0x2b1   :  { %v693_v19 = vadd.f32 %v692_v18, %v691_v17 }
 0x2b3   :  { %v694_v20 = vrot.slane %v693_v19, 1 }
 0x2b5   :  { %v695_v21 = vadd.f32 %v694_v20, %v693_v19 }
 0x2b7   :  { %886 = vlog2.f32 %v695_v21 }
 0x2c4   :  { %v887_v22 = vpop.eup %886 }
 0x2c5   :  { %v697_v23 = vmul.f32 0.6931472, %v887_v22 }
 0x2c7   :  { %v698_v24 = vsub.f32 %v686_v11, %v697_v23 }
 0x2c9   :  { %699 = vst [vmem:[#allocation2] sm:$0x3] %v698_v24 }
 0x2ca   :  { %899 = shalt.err (!%p896_p4)
}
 0x2cb   :  { %709 = dma.vmem_to_hbm [thread:$0]  %s707_s4, 32, %s1231_s6, [#allocation3]  }
 0x2cc   :  { %908 = dma.done.wait [#allocation3], 32  }
 0x2cd   :  { %909 = vsyncadd [#allocation3], 4294967264 }
 0x2ce   :  { %713 = vsyncpa [#allocation3], 1 }

// kernel: tpu_custom_call.1
= control target key start
LH: loop header
LB: loop body
LE: loop exit
PB: predicated region body
PF: predicated region fallthrough
CT: control target
= control target key end

     0   :  { %v437_v1 = vmov 0.0   ;;  %vm97_vm0 = vcmask 261120   ;;  %vm438_vm1 = vmmov 0   ;;  %s569_s0 = inlined_call_operand.vmem [shape: bf16[128,32], index: 0, kind: input, shape index: {}]   ;;  %s570_s1 = inlined_call_operand.vmem [shape: bf16[128,32], index: 1, kind: input, shape index: {}]   ;;  %s571_s2 = inlined_call_operand.vmem [shape: bf16[8,32], index: 2, kind: input, shape index: {}]   ;;  %s572_s3 = inlined_call_operand.vmem [shape: bf16[8,32], index: 3, kind: input, shape index: {}]   ;;  %s573_s4 = inlined_call_operand.vmem [shape: f32[8,1], index: 4, kind: input, shape index: {}]   ;;  %s574_s5 = inlined_call_operand.hbm [shape: f32[2,128], index: 5, kind: output, shape index: {}]  }
   0x1   :  { %v395_v0 = vld [vmem:[%s570_s1 + $0x38] sm:$0xff]   ;;  %350 = vmatprep.subr.bf16.mxu0 %v437_v1  ;;  %370 = vmatprep.subr.bf16.mxu1 %v437_v1  ;;  %v397_v5 = vld [vmem:[%s570_s1 + $0x30] sm:$0xff]   ;;  %v399_v9 = vld [vmem:[%s570_s1 + $0x28] sm:$0xff]  }
   0x2   :  { %v396_v2 = vld [vmem:[%s569_s0 + $0x38] sm:$0xff]   ;;  %v123_v3 = vsel %vm97_vm0, %v395_v0, 0  ;;  %v398_v6 = vld [vmem:[%s569_s0 + $0x30] sm:$0xff]   ;;  %v120_v7 = vsel %vm97_vm0, %v397_v5, 0  ;;  %v400_v10 = vld [vmem:[%s569_s0 + $0x28] sm:$0xff]   ;;  %v117_v11 = vsel %vm97_vm0, %v399_v9, 0  ;;  %366 = vmatprep.mubr.msk.bf16.mxu0 %vm438_vm1, %v437_v1  ;;  %386 = vmatprep.mubr.msk.bf16.mxu1 %vm438_vm1, %v437_v1 }
   0x3   :  { %351 = vmatpush3.bf16.xpose.msra.mxu0 %v123_v3  ;;  %v230_v4 = vsel %vm97_vm0, %v396_v2, 0  ;;  %v227_v8 = vsel %vm97_vm0, %v398_v6, 0  ;;  %v224_v12 = vsel %vm97_vm0, %v400_v10, 0  ;;  %v56_v13 = vld [vmem:[%s573_s4] sm:$0xff] }
   0x4   :  { %371 = vmatpush3.bf16.xpose.msra.mxu1 %v230_v4  ;;  %352 = vmatprep.subr.bf16.mxu0 %v437_v1 }
   0x5   :  { %372 = vmatprep.subr.bf16.mxu1 %v437_v1 }
   0xb   :  { %353 = vmatpush3.bf16.xpose.msra.mxu0 %v120_v7 }
   0xc   :  { %373 = vmatpush3.bf16.xpose.msra.mxu1 %v227_v8  ;;  %354 = vmatprep.subr.bf16.mxu0 %v437_v1 }
   0xd   :  { %374 = vmatprep.subr.bf16.mxu1 %v437_v1 }
   0xe   :  { %10 = vsyncpa [#allocation3], 0  ;;  %v439_v14 = vmov 0   ;;  %v401_v15 = vld [vmem:[%s570_s1 + $0x20] sm:$0xff]   ;;  %v403_v19 = vld [vmem:[%s570_s1 + $0x18] sm:$0xff]   ;;  %vm278_vm2 = vcmask 1041408  }
   0xf   :  { %394 = vset.pattern.permute.xlu0 %v439_v14  ;;  %v402_v16 = vld [vmem:[%s569_s0 + $0x20] sm:$0xff]   ;;  %v114_v17 = vsel %vm97_vm0, %v401_v15, 0  ;;  %v404_v20 = vld [vmem:[%s569_s0 + $0x18] sm:$0xff]   ;;  %v111_v21 = vsel %vm97_vm0, %v403_v19, 0  ;;  %v405_v23 = vld [vmem:[%s570_s1 + $0x10] sm:$0xff]  }
  0x10   :  { %274 = vperm.xlu0 %394, %v56_v13   ;;  %v221_v18 = vsel %vm97_vm0, %v402_v16, 0  ;;  %v218_v22 = vsel %vm97_vm0, %v404_v20, 0  ;;  %v406_v24 = vld [vmem:[%s569_s0 + $0x10] sm:$0xff]   ;;  %v108_v25 = vsel %vm97_vm0, %v405_v23, 0  ;;  %v407_v27 = vld [vmem:[%s570_s1 + $0x8] sm:$0xff]   ;;  %v409_v31 = vld [vmem:[%s570_s1] sm:$0xff]  }
  0x11   :  { %v215_v26 = vsel %vm97_vm0, %v406_v24, 0  ;;  %v408_v28 = vld [vmem:[%s569_s0 + $0x8] sm:$0xff]   ;;  %v105_v29 = vsel %vm97_vm0, %v407_v27, 0  ;;  %v410_v32 = vld [vmem:[%s569_s0] sm:$0xff]   ;;  %v102_v33 = vsel %vm97_vm0, %v409_v31, 0  ;;  %s440_s0 = smov [#allocation2]  }
  0x12   :  { %v212_v30 = vsel %vm97_vm0, %v408_v28, 0  ;;  %v209_v34 = vsel %vm97_vm0, %v410_v32, 0  ;;  %v55_v35 = vld [vmem:[%s572_s3] sm:$0xf]  ;;  %s306_s1 = sshll.u32 %s440_s0, 4  ;;  %s307_s1 = int_to_ptr.vmem [resolvable:$true] %s306_s1 }
  0x13   :  { %355 = vmatpush3.bf16.xpose.msra.mxu0 %v117_v11  ;;  %v54_v36 = vld [vmem:[%s571_s2] sm:$0xf]  ;;  %s415_s2 = scalar_lea.vmem %s307_s1, 32  ;;  %p420_p1 = scmp.lt.s32.totalorder %s307_s1, %s307_s1 }
  0x14   :  { %375 = vmatpush3.bf16.xpose.msra.mxu1 %v224_v12  ;;  %356 = vmatprep.subr.bf16.mxu0 %v437_v1  ;;  %p416_p0 = scmp.ne.s32.totalorder %s307_s1, %s415_s2  ;;  %p421_p2 = scmp.lt.s32.totalorder %s415_s2, %s415_s2 }
  0x15   :  { %376 = vmatprep.subr.bf16.mxu1 %v437_v1 }
  0x16   :  { %p422_p3 = por %p421_p2, %p420_p1 }
  0x18   :  { %p423_p4 = pnand %p422_p3, %p416_p0 }
  0x1b   :  { %357 = vmatpush3.bf16.xpose.msra.mxu0 %v114_v17 }
  0x1c   :  { %377 = vmatpush3.bf16.xpose.msra.mxu1 %v221_v18  ;;  %358 = vmatprep.subr.bf16.mxu0 %v437_v1 }
  0x1d   :  { %378 = vmatprep.subr.bf16.mxu1 %v437_v1 }
  0x23   :  { %359 = vmatpush3.bf16.xpose.msra.mxu0 %v111_v21 }
  0x24   :  { %379 = vmatpush3.bf16.xpose.msra.mxu1 %v218_v22  ;;  %360 = vmatprep.subr.bf16.mxu0 %v437_v1 }
  0x25   :  { %380 = vmatprep.subr.bf16.mxu1 %v437_v1 }
  0x2b   :  { %361 = vmatpush3.bf16.xpose.msra.mxu0 %v108_v25 }
  0x2c   :  { %381 = vmatpush3.bf16.xpose.msra.mxu1 %v215_v26  ;;  %362 = vmatprep.subr.bf16.mxu0 %v437_v1 }
  0x2d   :  { %382 = vmatprep.subr.bf16.mxu1 %v437_v1 }
  0x33   :  { %363 = vmatpush3.bf16.xpose.msra.mxu0 %v105_v29 }
  0x34   :  { %383 = vmatpush3.bf16.xpose.msra.mxu1 %v212_v30  ;;  %364 = vmatprep.subr.bf16.mxu0 %v437_v1 }
  0x35   :  { %384 = vmatprep.subr.bf16.mxu1 %v437_v1 }
  0x3b   :  { %365 = vmatpush3.bf16.xpose.msra.mxu0 %v102_v33 }
  0x3c   :  { %385 = vmatpush3.bf16.xpose.msra.mxu1 %v209_v34 }
  0x42   :  { %367 = vmatmul.mubr.msk.bf16.vlgmr.msra.gmra.mxu0 %vm97_vm0, %v55_v35 }
  0x43   :  { %387 = vmatmul.mubr.msk.bf16.vlgmr.msra.gmra.mxu1 %vm97_vm0, %v54_v36 }
  0x8b   :  { %v275_v39 = vpop.permute.xlu0 %274 }
 0x102   :  { %v159_v37 = vpop.f32.mrf.mxu0 }
 0x103   :  { %v266_v38 = vpop.f32.mrf.mxu1 }
 0x104   :  { %v267_v40 = vadd.f32 %v266_v38, %v159_v37  ;;  %v368_v41 = vpop.f32.mrf.mxu0 }
 0x105   :  { %v388_v42 = vpop.f32.mrf.mxu1 }
 0x106   :  { %v277_v43 = vadd.f32 %v275_v39, %v267_v40  ;;  %v162_v44 = vpop.f32.mrf.mxu0 }
 0x107   :  { %v269_v45 = vpop.f32.mrf.mxu1 }
 0x108   :  { %v279_v46 = vsel %vm278_vm2, %v277_v43, -inf  ;;  %v369_v47 = vpop.f32.mrf.mxu0 }
 0x109   :  { %v280_v48 = vrot.slane %v279_v46, 4  ;;  %v389_v49 = vpop.f32.mrf.mxu1 }
 0x10b   :  { %v281_v50 = vmax.f32 %v279_v46, %v280_v48 }
 0x10d   :  { %v282_v51 = vrot.slane %v281_v50, 2 }
 0x10f   :  { %v283_v52 = vmax.f32 %v281_v50, %v282_v51 }
 0x111   :  { %v284_v53 = vrot.slane %v283_v52, 1 }
 0x113   :  { %v285_v54 = vmax.f32 %v283_v52, %v284_v53 }
 0x115   :  { %v286_v55 = vsub.f32 %v277_v43, %v285_v54 }
 0x117   :  { %v287_v56 = vmul.f32 1.442695, %v286_v55 }
 0x119   :  { %411 = vpow2.f32 %v287_v56 }
 0x126   :  { %v412_v57 = vpop.eup %411 }
 0x127   :  { %v289_v58 = vsel %vm278_vm2, %v412_v57, 0.0 }
 0x128   :  { %v290_v59 = vrot.slane %v289_v58, 4 }
 0x12a   :  { %v291_v60 = vadd.f32 %v290_v59, %v289_v58 }
 0x12c   :  { %v292_v61 = vrot.slane %v291_v60, 2 }
 0x12e   :  { %v293_v62 = vadd.f32 %v292_v61, %v291_v60 }
 0x130   :  { %v294_v63 = vrot.slane %v293_v62, 1 }
 0x132   :  { %v295_v0 = vadd.f32 %v294_v63, %v293_v62 }
 0x134   :  { %413 = vlog2.f32 %v295_v0 }
 0x141   :  { %v414_v1 = vpop.eup %413 }
 0x142   :  { %v297_v2 = vmul.f32 0.6931472, %v414_v1 }
 0x144   :  { %v298_v3 = vsub.f32 %v286_v55, %v297_v2 }
 0x146   :  { %299 = vst [vmem:[#allocation2] sm:$0x3] %v298_v3 }
 0x147   :  { %426 = shalt.err (!%p423_p4)
}
 0x148   :  { %309 = dma.vmem_to_hbm [thread:$0]  %s307_s1, 32, %s574_s5, [#allocation3]  }
 0x149   :  { %435 = dma.done.wait [#allocation3], 32  }
 0x14a   :  { %436 = vsyncadd [#allocation3], 4294967264 }
 0x14b   :  { %313 = vsyncpa [#allocation3], 1 }

</bundles_post_ra>
